<compile_context>
chip_gen: v5e
topology: v5e:2x2
jax: 0.10.0
libtpu: 0.0.40
codegen_flags: <defaults>
</compile_context>

<pallas_src>
import functools
import numpy as np

import jax
import jax.numpy as jnp
from jax import lax
from jax.experimental import pallas as pl
from jax.experimental.pallas import tpu as pltpu

_EPS = 1e-7


def _per_box_loss(pred_ref, tgt_ref, mode):
    # pred_ref / tgt_ref: (4, Rblk, 128) VMEM tiles; [c] -> dense (Rblk, 128) plane.
    px1 = pred_ref[0].astype(jnp.float32)
    py1 = pred_ref[1].astype(jnp.float32)
    px2 = pred_ref[2].astype(jnp.float32)
    py2 = pred_ref[3].astype(jnp.float32)
    tx1 = tgt_ref[0].astype(jnp.float32)
    ty1 = tgt_ref[1].astype(jnp.float32)
    tx2 = tgt_ref[2].astype(jnp.float32)
    ty2 = tgt_ref[3].astype(jnp.float32)

    pred_area = (px2 - px1) * (py2 - py1)
    tgt_area = (tx2 - tx1) * (ty2 - ty1)

    w_int = jnp.maximum(jnp.minimum(px2, tx2) - jnp.maximum(px1, tx1), 0.0)
    h_int = jnp.maximum(jnp.minimum(py2, ty2) - jnp.maximum(py1, ty1), 0.0)
    intersection = w_int * h_int
    union = pred_area + tgt_area - intersection
    iou = intersection / (union + _EPS)

    if mode == 'iou':
        return 1.0 - iou

    x1_min = jnp.minimum(px1, tx1)
    y1_min = jnp.minimum(py1, ty1)
    x2_max = jnp.maximum(px2, tx2)
    y2_max = jnp.maximum(py2, ty2)

    if mode == 'giou':
        enclosing_area = (x2_max - x1_min) * (y2_max - y1_min)
        giou = iou - (enclosing_area - union) / (enclosing_area + _EPS)
        return 1.0 - giou

    # diou / ciou -- sqrt-free: only the squared distances are needed.
    dcx = (px1 + px2) * 0.5 - (tx1 + tx2) * 0.5
    dcy = (py1 + py2) * 0.5 - (ty1 + ty2) * 0.5
    central_d2 = dcx * dcx + dcy * dcy + _EPS          # == sqrt(.)**2 of the torch code
    ex = x2_max - x1_min
    ey = y2_max - y1_min
    enclosing_diag2 = ex * ex + ey * ey + _EPS         # == sqrt(.)**2 of the torch code
    diou = iou - central_d2 / (enclosing_diag2 + _EPS)
    if mode == 'diou':
        return 1.0 - diou

    # ciou
    v = (4.0 / (np.pi ** 2)) * (
        jnp.arctan((tx2 - tx1) / jnp.maximum(ty2 - ty1, _EPS))
        - jnp.arctan((px2 - px1) / jnp.maximum(py2 - py1, _EPS))
    ) ** 2
    # TODO(synk): PyTorch computes alpha under torch.no_grad(); the forward value is
    # identical, only a custom VJP would additionally need lax.stop_gradient here.
    alpha = v / (1.0 - iou + v + _EPS)
    ciou = diou - alpha * v
    return 1.0 - ciou


def _iou_none_kernel(n_ref, pred_ref, tgt_ref, out_ref, *, mode):
    del n_ref  # box count not needed: padded lanes are sliced off in the wrapper
    out_ref[...] = _per_box_loss(pred_ref, tgt_ref, mode).astype(out_ref.dtype)


def _iou_sum_kernel(n_ref, pred_ref, tgt_ref, out_ref, acc_ref, *, mode, rblk):
    i = pl.program_id(0)

    @pl.when(i == 0)
    def _():
        acc_ref[...] = jnp.zeros_like(acc_ref)

    loss = _per_box_loss(pred_ref, tgt_ref, mode)

    # validity mask built in-kernel from the scalar-prefetched box count (no mask DMA)
    row = lax.broadcasted_iota(jnp.int32, loss.shape, 0)
    lane = lax.broadcasted_iota(jnp.int32, loss.shape, 1)
    gidx = (i * rblk + row) * 128 + lane
    acc_ref[...] += jnp.where(gidx < n_ref[0], loss, 0.0)

    @pl.when(i == pl.num_programs(0) - 1)
    def _():
        out_ref[...] = jnp.sum(acc_ref[...]).reshape(1, 1)


def iou_loss(pred, target, mode='giou', reduction='mean', loss_weight=1.0,
             max_block_rows=256):
    assert mode in ('iou', 'giou', 'diou', 'ciou')
    assert reduction in ('none', 'mean', 'sum')
    assert pred.shape == target.shape
    assert pred.shape[-1] == 4

    lead_shape = pred.shape[:-1]
    M = int(np.prod(lead_shape)) if lead_shape else 1

    # coordinate-planar padded layout: (4, Rp, 128), Rp a multiple of Rblk (and of 8)
    max_block_rows = max(8, (max_block_rows // 8) * 8)
    R0 = -(-M // 128)
    Rblk = min(max_block_rows, -(-R0 // 8) * 8)
    Rp = -(-R0 // Rblk) * Rblk
    Mp = Rp * 128

    # TODO(synk): accepting an upstream coordinate-planar (4, M) layout would remove
    # this wrapper-side transpose/pad HBM pass entirely.
    p = pred.reshape(M, 4).T          # (4, M)
    t = target.reshape(M, 4).T        # (4, M)
    if Mp != M:
        p = jnp.pad(p, ((0, 0), (0, Mp - M)))
        t = jnp.pad(t, ((0, 0), (0, Mp - M)))
    p = p.reshape(4, Rp, 128)
    t = t.reshape(4, Rp, 128)
    n = jnp.array([M], dtype=jnp.int32)

    grid = (Rp // Rblk,)
    in_specs = [
        pl.BlockSpec((4, Rblk, 128), lambda i, n_ref: (0, i, 0)),
        pl.BlockSpec((4, Rblk, 128), lambda i, n_ref: (0, i, 0)),
    ]

    if reduction == 'none':
        kernel = functools.partial(_iou_none_kernel, mode=mode)
        out_shape = jax.ShapeDtypeStruct((Rp, 128), jnp.float32)
        out_spec = pl.BlockSpec((Rblk, 128), lambda i, n_ref: (i, 0))
        scratch = []
        dim_sem = ("parallel",)
    else:
        kernel = functools.partial(_iou_sum_kernel, mode=mode, rblk=Rblk)
        out_shape = jax.ShapeDtypeStruct((1, 1), jnp.float32)
        out_spec = pl.BlockSpec((1, 1), lambda i, n_ref: (0, 0))
        scratch = [pltpu.VMEM((Rblk, 128), jnp.float32)]
        dim_sem = ("arbitrary",)

    result = pl.pallas_call(
        kernel,
        out_shape=out_shape,
        grid_spec=pltpu.PrefetchScalarGridSpec(
            num_scalar_prefetch=1,
            grid=grid,
            in_specs=in_specs,
            out_specs=out_spec,
            scratch_shapes=scratch,
        ),
        compiler_params=pltpu.CompilerParams(dimension_semantics=dim_sem),
    )(n, p, t)

    if reduction == 'none':
        loss = result.reshape(Mp)[:M].reshape(lead_shape).astype(pred.dtype)
    elif reduction == 'sum':
        loss = result[0, 0].astype(pred.dtype)
    else:  # mean
        loss = (result[0, 0] / M).astype(pred.dtype)
    return loss * jnp.asarray(loss_weight, dtype=loss.dtype)


# ---------- pure-JAX reference (mirrors the PyTorch forward) ----------
def _iou_loss_ref(pred, target, mode='giou', reduction='mean', loss_weight=1.0):
    px1, py1, px2, py2 = [pred[..., i] for i in range(4)]
    tx1, ty1, tx2, ty2 = [target[..., i] for i in range(4)]
    pa = (px2 - px1) * (py2 - py1)
    ta = (tx2 - tx1) * (ty2 - ty1)
    w = jnp.maximum(jnp.minimum(px2, tx2) - jnp.maximum(px1, tx1), 0)
    h = jnp.maximum(jnp.minimum(py2, ty2) - jnp.maximum(py1, ty1), 0)
    inter = w * h
    union = pa + ta - inter
    iou = inter / (union + _EPS)
    if mode == 'iou':
        loss = 1 - iou
    elif mode == 'giou':
        enc = (jnp.maximum(px2, tx2) - jnp.minimum(px1, tx1)) * \
              (jnp.maximum(py2, ty2) - jnp.minimum(py1, ty1))
        loss = 1 - (iou - (enc - union) / (enc + _EPS))
    else:
        cd = jnp.sqrt(((px1 + px2) / 2 - (tx1 + tx2) / 2) ** 2 +
                      ((py1 + py2) / 2 - (ty1 + ty2) / 2) ** 2 + _EPS)
        ed = jnp.sqrt((jnp.maximum(px2, tx2) - jnp.minimum(px1, tx1)) ** 2 +
                      (jnp.maximum(py2, ty2) - jnp.minimum(py1, ty1)) ** 2 + _EPS)
        diou = iou - cd ** 2 / (ed ** 2 + _EPS)
        if mode == 'ciou':
            v = 4 / np.pi ** 2 * (jnp.arctan((tx2 - tx1) / jnp.maximum(ty2 - ty1, _EPS)) -
                                  jnp.arctan((px2 - px1) / jnp.maximum(py2 - py1, _EPS))) ** 2
            alpha = v / (1 - iou + v + _EPS)
            loss = 1 - (diou - alpha * v)
        else:
            loss = 1 - diou
    if reduction == 'mean':
        loss = loss.mean()
    elif reduction == 'sum':
        loss = loss.sum()
    return loss * loss_weight


if __name__ == "__main__":
    key = jax.random.PRNGKey(0)
    B, N = 2, 8  # (B, N, 4) bboxes
    k1, k2, k3, k4 = jax.random.split(key, 4)

    # construct well-formed boxes: x2 > x1, y2 > y1
    p_xy = jax.random.uniform(k1, (B, N, 2), jnp.float32, 0.0, 10.0)
    p_wh = jax.random.uniform(k2, (B, N, 2), jnp.float32, 0.5, 5.0)
    t_xy = jax.random.uniform(k3, (B, N, 2), jnp.float32, 0.0, 10.0)
    t_wh = jax.random.uniform(k4, (B, N, 2), jnp.float32, 0.5, 5.0)
    pred = jnp.concatenate([p_xy, p_xy + p_wh], axis=-1)     # [x1, y1, x2, y2]
    target = jnp.concatenate([t_xy, t_xy + t_wh], axis=-1)   # [x1, y1, x2, y2]

    # defaults of the PyTorch module: mode='giou', reduction='mean', loss_weight=1.0
    out = jax.block_until_ready(iou_loss(pred, target, mode='giou', reduction='mean'))
    ref = _iou_loss_ref(pred, target, mode='giou', reduction='mean')
    np.testing.assert_allclose(np.asarray(out), np.asarray(ref), rtol=1e-5, atol=1e-5)

    # exercise every mode / reduction branch as a sanity check
    for mode in ('iou', 'giou', 'diou', 'ciou'):
        for reduction in ('none', 'sum', 'mean'):
            o = jax.block_until_ready(iou_loss(pred, target, mode=mode, reduction=reduction))
            r = _iou_loss_ref(pred, target, mode=mode, reduction=reduction)
            np.testing.assert_allclose(np.asarray(o), np.asarray(r), rtol=1e-5, atol=1e-5)

    print("KERNEL_OK")
</pallas_src>

<mosaic_0001>
module attributes {stable_mosaic.version = 11 : i64} {
  func.func @_iou_sum_kernel(%arg0: i32, %arg1: memref<1xi32, #tpu.memory_space<smem>>, %arg2: memref<4x8x128xf32, #tpu.memory_space<vmem>>, %arg3: memref<4x8x128xf32, #tpu.memory_space<vmem>>, %arg4: memref<1x1xf32, #tpu.memory_space<vmem>>, %arg5: memref<8x128xf32, #tpu.memory_space<vmem>>) attributes {dimension_semantics = [#tpu.dimension_semantics<arbitrary>], iteration_bounds = array<i64: 1>, scalar_prefetch = 1 : i64, scratch_operands = 1 : i64, tpu.core_type = #tpu.core_type<tc>, window_params = [{transform_indices = @transform_0, window_bounds = array<i64: 4, 8, 128>}, {transform_indices = @transform_1, window_bounds = array<i64: 4, 8, 128>}, {pipeline_mode = #tpu.pipeline_mode<synchronous>, transform_indices = @transform_2, window_bounds = array<i64: 1, 1>}]} {
    %c0_i32 = arith.constant 0 : i32
    %0 = arith.cmpi eq, %arg0, %c0_i32 : i32
    %1 = arith.extui %0 : i1 to i32
    %c0_i32_0 = arith.constant 0 : i32
    %2 = arith.cmpi ne, %1, %c0_i32_0 : i32
    scf.if %2 {
      %cst_33 = arith.constant 0.000000e+00 : f32
      %74 = vector.broadcast %cst_33 : f32 to vector<8x128xf32>
      %c0_34 = arith.constant 0 : index
      %c0_35 = arith.constant 0 : index
      %75 = vector.load %arg5[%c0_34, %c0_35] : memref<8x128xf32, #tpu.memory_space<vmem>>, vector<8x128xf32>
      tpu.vector_store %arg5[%c0_34, %c0_35], %74 {strides = array<i32>} : memref<8x128xf32, #tpu.memory_space<vmem>>, vector<8x128xf32>,
    } else {
    }
    %c0 = arith.constant 0 : index
    %c0_1 = arith.constant 0 : index
    %c0_2 = arith.constant 0 : index
    %3 = vector.load %arg2[%c0, %c0_1, %c0_2] : memref<4x8x128xf32, #tpu.memory_space<vmem>>, vector<1x8x128xf32>
    %4 = vector.shape_cast %3 : vector<1x8x128xf32> to vector<8x128xf32>
    %c1 = arith.constant 1 : index
    %c0_3 = arith.constant 0 : index
    %c0_4 = arith.constant 0 : index
    %5 = vector.load %arg2[%c1, %c0_3, %c0_4] : memref<4x8x128xf32, #tpu.memory_space<vmem>>, vector<1x8x128xf32>
    %6 = vector.shape_cast %5 : vector<1x8x128xf32> to vector<8x128xf32>
    %c2 = arith.constant 2 : index
    %c0_5 = arith.constant 0 : index
    %c0_6 = arith.constant 0 : index
    %7 = vector.load %arg2[%c2, %c0_5, %c0_6] : memref<4x8x128xf32, #tpu.memory_space<vmem>>, vector<1x8x128xf32>
    %8 = vector.shape_cast %7 : vector<1x8x128xf32> to vector<8x128xf32>
    %c3 = arith.constant 3 : index
    %c0_7 = arith.constant 0 : index
    %c0_8 = arith.constant 0 : index
    %9 = vector.load %arg2[%c3, %c0_7, %c0_8] : memref<4x8x128xf32, #tpu.memory_space<vmem>>, vector<1x8x128xf32>
    %10 = vector.shape_cast %9 : vector<1x8x128xf32> to vector<8x128xf32>
    %c0_9 = arith.constant 0 : index
    %c0_10 = arith.constant 0 : index
    %c0_11 = arith.constant 0 : index
    %11 = vector.load %arg3[%c0_9, %c0_10, %c0_11] : memref<4x8x128xf32, #tpu.memory_space<vmem>>, vector<1x8x128xf32>
    %12 = vector.shape_cast %11 : vector<1x8x128xf32> to vector<8x128xf32>
    %c1_12 = arith.constant 1 : index
    %c0_13 = arith.constant 0 : index
    %c0_14 = arith.constant 0 : index
    %13 = vector.load %arg3[%c1_12, %c0_13, %c0_14] : memref<4x8x128xf32, #tpu.memory_space<vmem>>, vector<1x8x128xf32>
    %14 = vector.shape_cast %13 : vector<1x8x128xf32> to vector<8x128xf32>
    %c2_15 = arith.constant 2 : index
    %c0_16 = arith.constant 0 : index
    %c0_17 = arith.constant 0 : index
    %15 = vector.load %arg3[%c2_15, %c0_16, %c0_17] : memref<4x8x128xf32, #tpu.memory_space<vmem>>, vector<1x8x128xf32>
    %16 = vector.shape_cast %15 : vector<1x8x128xf32> to vector<8x128xf32>
    %c3_18 = arith.constant 3 : index
    %c0_19 = arith.constant 0 : index
    %c0_20 = arith.constant 0 : index
    %17 = vector.load %arg3[%c3_18, %c0_19, %c0_20] : memref<4x8x128xf32, #tpu.memory_space<vmem>>, vector<1x8x128xf32>
    %18 = vector.shape_cast %17 : vector<1x8x128xf32> to vector<8x128xf32>
    %19 = arith.subf %8, %4 : vector<8x128xf32>
    %20 = arith.subf %10, %6 : vector<8x128xf32>
    %21 = arith.mulf %19, %20 : vector<8x128xf32>
    %22 = arith.subf %16, %12 : vector<8x128xf32>
    %23 = arith.subf %18, %14 : vector<8x128xf32>
    %24 = arith.mulf %22, %23 : vector<8x128xf32>
    %25 = arith.minimumf %8, %16 : vector<8x128xf32>
    %26 = arith.maximumf %4, %12 : vector<8x128xf32>
    %27 = arith.subf %25, %26 : vector<8x128xf32>
    %cst = arith.constant 0.000000e+00 : f32
    %28 = vector.broadcast %cst : f32 to vector<8x128xf32>
    %29 = arith.maximumf %27, %28 : vector<8x128xf32>
    %30 = arith.minimumf %10, %18 : vector<8x128xf32>
    %31 = arith.maximumf %6, %14 : vector<8x128xf32>
    %32 = arith.subf %30, %31 : vector<8x128xf32>
    %cst_21 = arith.constant 0.000000e+00 : f32
    %33 = vector.broadcast %cst_21 : f32 to vector<8x128xf32>
    %34 = arith.maximumf %32, %33 : vector<8x128xf32>
    %35 = arith.mulf %29, %34 : vector<8x128xf32>
    %36 = arith.addf %21, %24 : vector<8x128xf32>
    %37 = arith.subf %36, %35 : vector<8x128xf32>
    %cst_22 = arith.constant 1.000000e-07 : f32
    %38 = vector.broadcast %cst_22 : f32 to vector<8x128xf32>
    %39 = arith.addf %37, %38 : vector<8x128xf32>
    %40 = arith.divf %35, %39 : vector<8x128xf32>
    %41 = arith.minimumf %4, %12 : vector<8x128xf32>
    %42 = arith.minimumf %6, %14 : vector<8x128xf32>
    %43 = arith.maximumf %8, %16 : vector<8x128xf32>
    %44 = arith.maximumf %10, %18 : vector<8x128xf32>
    %45 = arith.subf %43, %41 : vector<8x128xf32>
    %46 = arith.subf %44, %42 : vector<8x128xf32>
    %47 = arith.mulf %45, %46 : vector<8x128xf32>
    %48 = arith.subf %47, %37 : vector<8x128xf32>
    %cst_23 = arith.constant 1.000000e-07 : f32
    %49 = vector.broadcast %cst_23 : f32 to vector<8x128xf32>
    %50 = arith.addf %47, %49 : vector<8x128xf32>
    %51 = arith.divf %48, %50 : vector<8x128xf32>
    %52 = arith.subf %40, %51 : vector<8x128xf32>
    %cst_24 = arith.constant 1.000000e+00 : f32
    %53 = vector.broadcast %cst_24 : f32 to vector<8x128xf32>
    %54 = arith.subf %53, %52 : vector<8x128xf32>
    %55 = tpu.iota {dimensions = array<i32: 0>} : vector<8x128xi32>
    %56 = tpu.iota {dimensions = array<i32: 1>} : vector<8x128xi32>
    %c8_i32 = arith.constant 8 : i32
    %57 = arith.muli %arg0, %c8_i32 : i32
    %58 = vector.broadcast %57 : i32 to vector<8x128xi32>
    %59 = arith.addi %58, %55 : vector<8x128xi32>
    %c128_i32 = arith.constant 128 : i32
    %60 = vector.broadcast %c128_i32 : i32 to vector<8x128xi32>
    %61 = arith.muli %59, %60 : vector<8x128xi32>
    %62 = arith.addi %61, %56 : vector<8x128xi32>
    %c0_25 = arith.constant 0 : index
    %c0_26 = arith.constant 0 : index
    %63 = vector.load %arg5[%c0_25, %c0_26] : memref<8x128xf32, #tpu.memory_space<vmem>>, vector<8x128xf32>
    %c0_27 = arith.constant 0 : index
    %64 = memref.load %arg1[%c0_27] : memref<1xi32, #tpu.memory_space<smem>>
    %65 = vector.broadcast %64 : i32 to vector<8x128xi32>
    %66 = arith.cmpi slt, %62, %65 : vector<8x128xi32>
    %cst_28 = arith.constant 0.000000e+00 : f32
    %67 = vector.broadcast %cst_28 : f32 to vector<8x128xf32>
    %68 = arith.select %66, %54, %67 : vector<8x128xi1>, vector<8x128xf32>
    %69 = arith.addf %63, %68 : vector<8x128xf32>
    %c0_29 = arith.constant 0 : index
    %c0_30 = arith.constant 0 : index
    %70 = vector.load %arg5[%c0_29, %c0_30] : memref<8x128xf32, #tpu.memory_space<vmem>>, vector<8x128xf32>
    tpu.vector_store %arg5[%c0_29, %c0_30], %69 {strides = array<i32>} : memref<8x128xf32, #tpu.memory_space<vmem>>, vector<8x128xf32>,
    %c0_i32_31 = arith.constant 0 : i32
    %71 = arith.cmpi eq, %arg0, %c0_i32_31 : i32
    %72 = arith.extui %71 : i1 to i32
    %c0_i32_32 = arith.constant 0 : i32
    %73 = arith.cmpi ne, %72, %c0_i32_32 : i32
    scf.if %73 {
      %c0_33 = arith.constant 0 : index
      %c0_34 = arith.constant 0 : index
      %74 = vector.load %arg5[%c0_33, %c0_34] : memref<8x128xf32, #tpu.memory_space<vmem>>, vector<8x128xf32>
      %75 = vector.shape_cast %74 : vector<8x128xf32> to vector<1x8x128xf32>
      %cst_35 = arith.constant dense<0.000000e+00> : vector<1xf32>
      %76 = vector.multi_reduction <add>, %75, %cst_35 [1, 2] : vector<1x8x128xf32> to vector<1xf32>
      %77 = vector.shape_cast %76 : vector<1xf32> to vector<1x1x1xf32>
      %78 = vector.extract %77[0, 0, 0] : f32 from vector<1x1x1xf32>
      %79 = vector.broadcast %78 : f32 to vector<1x1xf32>
      %c0_36 = arith.constant 0 : index
      %c0_37 = arith.constant 0 : index
      %80 = vector.load %arg4[%c0_36, %c0_37] : memref<1x1xf32, #tpu.memory_space<vmem>>, vector<1x1xf32>
      tpu.vector_store %arg4[%c0_36, %c0_37], %79 {strides = array<i32>} : memref<1x1xf32, #tpu.memory_space<vmem>>, vector<1x1xf32>,
    } else {
    }
    return
  }
  func.func @transform_0(%arg0: i32, %arg1: memref<1xi32, #tpu.memory_space<smem>>) -> (i32, i32, i32) {
    %c0_i32 = arith.constant 0 : i32
    %c0_i32_0 = arith.constant 0 : i32
    %c0_i32_1 = arith.constant 0 : i32
    return %c0_i32, %arg0, %c0_i32_0 : i32, i32, i32
  }
  func.func @transform_1(%arg0: i32, %arg1: memref<1xi32, #tpu.memory_space<smem>>) -> (i32, i32, i32) {
    %c0_i32 = arith.constant 0 : i32
    %c0_i32_0 = arith.constant 0 : i32
    %c0_i32_1 = arith.constant 0 : i32
    return %c0_i32, %arg0, %c0_i32_0 : i32, i32, i32
  }
  func.func @transform_2(%arg0: i32, %arg1: memref<1xi32, #tpu.memory_space<smem>>) -> (i32, i32) {
    %c0_i32 = arith.constant 0 : i32
    %c0_i32_0 = arith.constant 0 : i32
    %c0_i32_1 = arith.constant 0 : i32
    return %c0_i32, %c0_i32_0 : i32, i32
  }
}

</mosaic_0001>

<bundles_post_ra>
// kernel: tpu_custom_call.1
= control target key start
LH: loop header
LB: loop body
LE: loop exit
PB: predicated region body
PF: predicated region fallthrough
CT: control target
= control target key end

     0   :  { %9 = vsyncpa [#allocation6], 0  ;;  %s300_s0 = inlined_call_operand.<no memory space> [shape: s32[1], index: 0, kind: input, shape index: {}]   ;;  %s301_s1 = inlined_call_operand.hbm [shape: f32[4,8,128], index: 1, kind: input, shape index: {}]   ;;  %s302_s2 = inlined_call_operand.hbm [shape: f32[4,8,128], index: 2, kind: input, shape index: {}]   ;;  %s303_s3 = inlined_call_operand.hbm [shape: f32[1,1], index: 3, kind: output, shape index: {}]  }
   0x1   :  { %10 = vsyncpa [#allocation9], 0 }
   0x2   :  { %11 = vsyncpa [#allocation7], 0  ;;  %s16_s14 = sshll.u32 %s301_s1, 4  ;;  %s263_s15 = smov [#allocation5]   ;;  %s17_s14 = int_to_ptr.hbm [resolvable:$true] %s16_s14 }
   0x3   :  { %s18_s16 = sshll.u32 %s263_s15, 4  ;;  %s29_s19 = sshll.u32 %s302_s2, 4  ;;  %s19_s16 = int_to_ptr.vmem [resolvable:$true] %s18_s16  ;;  %s30_s19 = int_to_ptr.hbm [resolvable:$true] %s29_s19 }
   0x4   :  { %s264_s20 = smov 128   ;;  %s265_s21 = smov 8  }
   0x5   :  { %24 = dma.hbm_to_vmem [thread:$0]  %s17_s14, 512, %s19_s16, [#allocation6], %s264_s20, %s264_s20, %s265_s21  }
   0x6   :  { %s266_s22 = smov [#allocation8]  }
   0x7   :  { %s31_s23 = sshll.u32 %s266_s22, 4  ;;  %s32_s23 = int_to_ptr.vmem [resolvable:$true] %s31_s23 }
   0x8   :  { %37 = dma.hbm_to_vmem [thread:$0]  %s30_s19, 512, %s32_s23, [#allocation9], %s264_s20, %s264_s20, %s265_s21  }
   0x9   :  { %257 = dma.done.wait [#allocation6], 512  }
   0xa   :  { %258 = vsyncadd [#allocation6], 4294966784 }
   0xb   :  { %259 = dma.done.wait [#allocation9], 512  }
   0xc   :  { %260 = vsyncadd [#allocation9], 4294966784  ;;  %v51_v0 = vld [vmem:[#allocation5] sm:$0xff]  ;;  %v53_v1 = vld [vmem:[#allocation5 + $0x8] sm:$0xff]  ;;  %v124_v37 = vlaneseq  ;;  %v135_v62 = vstv %s300_s0  ;;  %s267_s24 = smov [#allocation10]   ;;  %s163_s28 = sshll.u32 %s303_s3, 4  ;;  %s164_s28 = int_to_ptr.hbm [resolvable:$true] %s163_s28 }
   0xd   :  { %v55_v2 = vld [vmem:[#allocation5 + $0x10] sm:$0xff]  ;;  %v57_v3 = vld [vmem:[#allocation5 + $0x18] sm:$0xff]  ;;  %v58_v4 = vld [vmem:[#allocation8] sm:$0xff]  ;;  %s161_s25 = sshll.u32 %s267_s24, 4  ;;  %vm154_vm9 = vcmask 0   ;;  %s162_s25 = int_to_ptr.vmem [resolvable:$true] %s161_s25 }
   0xe   :  { %v60_v5 = vld [vmem:[#allocation8 + $0x8] sm:$0xff]  ;;  %v65_v6 = vsub.f32 %v55_v2, %v51_v0  ;;  %v62_v7 = vld [vmem:[#allocation8 + $0x10] sm:$0xff]  ;;  %v64_v8 = vld [vmem:[#allocation8 + $0x18] sm:$0xff]  ;;  %v66_v9 = vsub.f32 %v57_v3, %v53_v1  ;;  %v72_v10 = vmax.f32 %v51_v0, %v58_v4  ;;  %v98_v12 = vmin.f32 %v51_v0, %v58_v4 }
   0xf   :  { %v76_v11 = vmax.f32 %v53_v1, %v60_v5  ;;  %v68_v13 = vsub.f32 %v62_v7, %v58_v4  ;;  %v69_v14 = vsub.f32 %v64_v8, %v60_v5  ;;  %v71_v15 = vmin.f32 %v55_v2, %v62_v7 }
  0x10   :  { %v75_v16 = vmin.f32 %v57_v3, %v64_v8  ;;  %v67_v17 = vmul.f32 %v66_v9, %v65_v6  ;;  %v99_v18 = vmin.f32 %v53_v1, %v60_v5  ;;  %v100_v19 = vmax.f32 %v55_v2, %v62_v7 }
  0x11   :  { %v101_v20 = vmax.f32 %v57_v3, %v64_v8  ;;  %v70_v21 = vmul.f32 %v69_v14, %v68_v13  ;;  %v73_v22 = vsub.f32 %v71_v15, %v72_v10  ;;  %v125_v45 = vshrl.u32 %v124_v37, 7 }
  0x12   :  { %v77_v23 = vsub.f32 %v75_v16, %v76_v11  ;;  %v102_v24 = vsub.f32 %v100_v19, %v98_v12  ;;  %v127_v53 = vand.u32 127, %v124_v37 }
  0x13   :  { %v103_v25 = vsub.f32 %v101_v20, %v99_v18  ;;  %v74_v26 = vmax.f32 %v73_v22, 0.0  ;;  %v80_v28 = vadd.f32 %v70_v21, %v67_v17  ;;  %v131_v54 = vmul.u32 128, %v125_v45 }
  0x14   :  { %v78_v27 = vmax.f32 %v77_v23, 0.0 }
  0x15   :  { %v104_v29 = vmul.f32 %v103_v25, %v102_v24  ;;  %v132_v60 = vadd.s32 %v131_v54, %v127_v53 }
  0x16   :  { %v79_v30 = vmul.f32 %v78_v27, %v74_v26 }
  0x17   :  { %v106_v31 = vadd.f32 1e-07, %v104_v29  ;;  %vm136_vm8 = vcmp.lt.s32.totalorder %v132_v60, %v135_v62 }
  0x18   :  { %v81_v32 = vsub.f32 %v80_v28, %v79_v30 }
  0x19   :  { %181 = vrcp.f32 %v106_v31  ;;  %v118_v36 = vand.u32 2147483648, %v106_v31  ;;  %vm112_vm0 = vweird.f32 %v106_v31  ;;  %v116_v40 = vand.u32 2147483647, %v106_v31 }
  0x1a   :  { %v82_v33 = vadd.f32 1e-07, %v81_v32  ;;  %v105_v50 = vsub.f32 %v104_v29, %v81_v32 }
  0x1b   :  { %v119_v44 = vor.u32 1.1754944e-38, %v118_v36  ;;  %vm117_vm5 = vcmp.eq.f32.partialorder %v116_v40, 8.507059e+37 }
  0x1c   :  { %183 = vrcp.f32 %v82_v33  ;;  %v94_v42 = vand.u32 2147483648, %v82_v33  ;;  %vm88_vm2 = vweird.f32 %v82_v33  ;;  %v92_v47 = vand.u32 2147483647, %v82_v33 }
  0x1e   :  { %v95_v51 = vor.u32 1.1754944e-38, %v94_v42  ;;  %vm93_vm7 = vcmp.eq.f32.partialorder %v92_v47, 8.507059e+37 }
  0x1f   :  { %v182_v34 = vpop.eup %181 }
  0x20   :  { %v108_v35 = vmul.f32 %v182_v34, %v106_v31  ;;  %vm113_vm1 = vweird.f32 %v182_v34 }
  0x21   :  { %vm114_vm4 = vmor %vm112_vm0, %vm113_vm1 }
  0x22   :  { %v184_v38 = vpop.eup %183  ;;  %v109_v39 = vsub.f32 1.0, %v108_v35 }
  0x23   :  { %v84_v41 = vmul.f32 %v184_v38, %v82_v33  ;;  %vm89_vm3 = vweird.f32 %v184_v38 }
  0x24   :  { %v110_v43 = vmul.f32 %v182_v34, %v109_v39  ;;  %vm90_vm6 = vmor %vm88_vm2, %vm89_vm3 }
  0x25   :  { %v85_v46 = vsub.f32 1.0, %v84_v41 }
  0x26   :  { %v111_v48 = vadd.f32 %v182_v34, %v110_v43 }
  0x27   :  { %v86_v49 = vmul.f32 %v184_v38, %v85_v46 }
  0x28   :  { %v115_v52 = vsel %vm114_vm4, %v182_v34, %v111_v48 }
  0x29   :  { %v87_v55 = vadd.f32 %v184_v38, %v86_v49  ;;  %v120_v56 = vsel %vm117_vm5, %v119_v44, %v115_v52 }
  0x2a   :  { %v121_v58 = vmul.f32 %v120_v56, %v105_v50 }
  0x2b   :  { %v91_v57 = vsel %vm90_vm6, %v184_v38, %v87_v55 }
  0x2c   :  { %v96_v59 = vsel %vm93_vm7, %v95_v51, %v91_v57 }
  0x2d   :  { %v97_v61 = vmul.f32 %v96_v59, %v79_v30 }
  0x2f   :  { %v122_v63 = vsub.f32 %v97_v61, %v121_v58 }
  0x31   :  { %v123_v0 = vsub.f32 1.0, %v122_v63 }
  0x33   :  { %v137_v1 = vsel %vm136_vm8, %v123_v0, 0.0 }
  0x34   :  { %144 = vadd.xlane.f32.xlu0 %v137_v1 }
  0xa7   :  { %v145_v2 = vpop.xlane.xlu0 %144 }
  0xa8   :  { %v146_v3 = vrot.slane %v145_v2, 4 }
  0xaa   :  { %v147_v4 = vadd.f32 %v146_v3, %v145_v2 }
  0xac   :  { %v148_v5 = vrot.slane %v147_v4, 2 }
  0xae   :  { %v149_v6 = vadd.f32 %v148_v5, %v147_v4 }
  0xb0   :  { %v150_v7 = vrot.slane %v149_v6, 1 }
  0xb2   :  { %v151_v8 = vadd.f32 %v150_v7, %v149_v6 }
  0xb4   :  { %174 = vpush %v151_v8 }
  0xe5   :  { %s175_s0 = spop %174 }
  0xe6   :  { %v153_v9 = vstv %s175_s0 }
  0xe7   :  { %155 = vst.msk [vmem:[#allocation10] sm:$0x1] %vm154_vm9, %v153_v9 }
  0xe8   :  { %166 = dma.vmem_to_hbm [thread:$0]  %s162_s25, 16, %s164_s28, [#allocation7]  }
  0xe9   :  { %261 = dma.done.wait [#allocation7], 16  }
  0xea   :  { %262 = vsyncadd [#allocation7], 4294967280 }
  0xeb   :  { %171 = vsyncpa [#allocation6], 1 }
  0xec   :  { %172 = vsyncpa [#allocation9], 1 }
  0xed   :  { %173 = vsyncpa [#allocation7], 1 }

</bundles_post_ra>
